<compile_context>
chip_gen: v7x
topology: tpu7x:2x2x1
jax: 0.10.0
libtpu: 0.0.40
codegen_flags: <defaults>
</compile_context>

<pallas_src>
import math

import jax
import jax.numpy as jnp
from jax import lax
from jax.experimental import pallas as pl
from jax.experimental.pallas import tpu as pltpu


def _diver_kernel(docs_ref,   # (Bt, 2, 1) int32   [docs1 | docs2]
                  x_ref,      # (Bt, Q, V) f32     current_denc block
                  xt_ref,     # (Bt, V, Q) f32     current_denc^T block (host-precomputed)
                  wt_ref,     # (V, M*V)   f32     W.weight^T
                  mask_ref,   # (M*V, M*Q) f32     block-diagonal indicator
                  gaw_ref,    # (M*Q, M)   f32     (m == m') * aggr_weight[j]
                  ab_ref,     # (1, 1)     f32     aggr bias
                  out_ref):   # (Bt, 2, M) f32     [score1 ; score2]
    Bt, Q, V = x_ref.shape
    MV = wt_ref.shape[1]
    M = MV // V

    # Hoisted (loaded once per grid step).
    wt = wt_ref[...]
    mask = mask_ref[...]
    gaw = gaw_ref[...]
    ab = ab_ref[...]

    # (1) One fused MXU op across batch *and* mult: (Bt*Q, V) @ (V, M*V).
    x_all = x_ref[...]
    y = jnp.dot(x_all.reshape(Bt * Q, V), wt,
                preferred_element_type=jnp.float32)            # (Bt*Q, M*V)

    # Small static loop over the batch elements inside this block.
    for lb in range(Bt):
        y_b = y[lb * Q:(lb + 1) * Q, :]                        # (Q, M*V)
        xt_b = xt_ref[lb]                                      # (V, Q)

        # (2) Single MXU pass for all M similarity blocks:
        #     bd = blockdiag(x_b^T) of shape (M*V, M*Q).
        tiled = jnp.concatenate([xt_b] * M, axis=1)            # (V, M*Q)
        bd = jnp.concatenate([tiled] * M, axis=0) * mask       # (M*V, M*Q)
        # sim[q, m*Q + j] = <W_m x_q, x_j>  == mult_sim_matrix[b, m, q, j]
        sim = jnp.dot(y_b, bd, preferred_element_type=jnp.float32)   # (Q, M*Q)

        # (3) Softmax over q (axis 0) -- only numerators we need + denominator.
        smax = jnp.max(sim, axis=0, keepdims=True)             # (1, M*Q)
        e = jnp.exp(sim - smax)                                # (Q, M*Q)
        denom = jnp.sum(e, axis=0, keepdims=True)              # (1, M*Q)

        # Fused docs1/docs2 gather: one (2, Q) one-hot contraction.
        # NOTE: an out-of-range doc index yields an all-zero row (score =
        # 1 - tanh(bias)) instead of raising like torch.gather would.
        oh = (lax.broadcasted_iota(jnp.int32, (2, Q), 1)
              == docs_ref[lb]).astype(jnp.float32)             # (2, Q)
        e_sel = jnp.dot(oh, e, preferred_element_type=jnp.float32)   # (2, M*Q)
        p = e_sel / denom           # exact divide (keeps tight parity)  (2, M*Q)

        # (4) Aggregation Linear(Q -> 1) folded into one matmul, + bias, tanh.
        z = jnp.dot(p, gaw, preferred_element_type=jnp.float32) + ab  # (2, M)
        out_ref[lb, :, :] = 1.0 - jnp.tanh(z)


def _pick_block_batch(B, Q):
    """Largest divisor of B such that Bt*Q stays a modest number of sublanes."""
    cap = max(1, 128 // max(Q, 1))
    bt = 1
    for d in range(1, min(B, cap) + 1):
        if B % d == 0:
            bt = d
    return bt


def diver_forward(current_denc, docs1, docs2, W, aggr_w, aggr_b,
                  *, max_qdnum_cur, vec_len, mult):
    B, Q, V = current_denc.shape
    assert Q == max_qdnum_cur and V == vec_len
    M = mult
    MQ, MV = M * Q, M * V
    Bt = _pick_block_batch(B, Q)

    x = current_denc.astype(jnp.float32)
    xt = jnp.transpose(x, (0, 2, 1))                       # (B, V, Q)
    wt = jnp.transpose(W.astype(jnp.float32))              # (V, M*V) -- one transpose of W

    # Block-diagonal indicator for the fused similarity matmul.
    mask = (jnp.arange(MV, dtype=jnp.int32)[:, None] // V
            == jnp.arange(MQ, dtype=jnp.int32)[None, :] // Q).astype(jnp.float32)
    # Aggregation matrix with the aggr weight folded in: gaw[m*Q+j, m'] = (m==m') * aw[j].
    aw = aggr_w.reshape(Q).astype(jnp.float32)
    gaw = ((jnp.arange(MQ, dtype=jnp.int32)[:, None] // Q
            == jnp.arange(M, dtype=jnp.int32)[None, :]).astype(jnp.float32)
           * aw[jnp.arange(MQ) % Q][:, None])               # (M*Q, M)
    ab = aggr_b.reshape(1, 1).astype(jnp.float32)
    docs = jnp.stack([docs1, docs2], axis=1).astype(jnp.int32).reshape(B, 2, 1)

    flops = B * (2 * Q * V * MV + 2 * Q * MV * MQ + 2 * 2 * Q * MQ + 2 * 2 * MQ * M)
    bytes_accessed = 4 * (2 * B * Q * V + V * MV + MV * MQ + MQ * M + 1
                          + B * 2 + B * 2 * M)
    cost = pl.CostEstimate(flops=flops,
                           transcendentals=B * (Q * MQ + 2 * M),
                           bytes_accessed=bytes_accessed)

    grid_spec = pltpu.PrefetchScalarGridSpec(
        num_scalar_prefetch=0,
        grid=(B // Bt,),
        in_specs=[
            pl.BlockSpec((Bt, 2, 1), lambda i: (i, 0, 0)),   # docs (int32)
            pl.BlockSpec((Bt, Q, V), lambda i: (i, 0, 0)),   # current_denc
            pl.BlockSpec((Bt, V, Q), lambda i: (i, 0, 0)),   # current_denc^T
            pl.BlockSpec((V, MV),    lambda i: (0, 0)),      # W^T
            pl.BlockSpec((MV, MQ),   lambda i: (0, 0)),      # block-diag mask
            pl.BlockSpec((MQ, M),    lambda i: (0, 0)),      # aggr selector (aw folded)
            pl.BlockSpec((1, 1),     lambda i: (0, 0)),      # aggr bias
        ],
        out_specs=pl.BlockSpec((Bt, 2, M), lambda i: (i, 0, 0)),
    )

    out = pl.pallas_call(
        _diver_kernel,
        grid_spec=grid_spec,
        out_shape=jax.ShapeDtypeStruct((B, 2, M), jnp.float32),
        compiler_params=pltpu.CompilerParams(
            dimension_semantics=("parallel",)),   # batch blocks are independent
        cost_estimate=cost,
    )(docs, x, xt, wt, mask, gaw, ab)

    return out[:, 0, :], out[:, 1, :]


def diver_reference(x, docs1, docs2, W, aw, ab, Q, V, M):
    """Pure-JAX transcription of the PyTorch forward (for validation)."""
    B = x.shape[0]
    y = jnp.einsum('bqu,ou->bqo', x, W)                  # (B, Q, M*V)
    yv = y.reshape(B, Q * M, V)                          # view(-1, Q*M, V)
    sim = jnp.einsum('brv,bjv->brj', yv, x)              # bmm with x^T
    sim = sim.reshape(B, Q, M, Q).transpose(0, 2, 1, 3)  # (B, M, Q, Q)
    p = jax.nn.softmax(sim, axis=2)                      # softmax(dim=2)
    sel1 = jax.vmap(lambda pb, d: pb[:, d, :])(p, docs1)
    sel2 = jax.vmap(lambda pb, d: pb[:, d, :])(p, docs2)
    z1 = jnp.einsum('bmq,q->bm', sel1, aw.reshape(Q)) + ab.reshape(())
    z2 = jnp.einsum('bmq,q->bm', sel2, aw.reshape(Q)) + ab.reshape(())
    return 1.0 - jnp.tanh(z1), 1.0 - jnp.tanh(z2)


if __name__ == "__main__":
    # Small shapes consistent with the module: batch=2, Q=8, V=32, mult=4.
    B, Q, V, M = 2, 8, 32, 4

    key = jax.random.PRNGKey(0)
    kW, kaw, kab, kx, kd1, kd2 = jax.random.split(key, 6)

    W = jax.random.normal(kW, (M * V, V), dtype=jnp.float32) * math.sqrt(2.0 / (M * V + V))
    aggr_w = jax.random.normal(kaw, (1, Q), dtype=jnp.float32) * math.sqrt(2.0 / (1 + Q))
    aggr_b = jax.random.uniform(kab, (1,), dtype=jnp.float32,
                                minval=-1.0 / math.sqrt(Q), maxval=1.0 / math.sqrt(Q))

    x = jax.random.normal(kx, (B, Q, V), dtype=jnp.float32)
    docs1 = jax.random.randint(kd1, (B,), 0, Q, dtype=jnp.int32)
    docs2 = jax.random.randint(kd2, (B,), 0, Q, dtype=jnp.int32)

    s1, s2 = diver_forward(x, docs1, docs2, W, aggr_w, aggr_b,
                           max_qdnum_cur=Q, vec_len=V, mult=M)
    jax.block_until_ready((s1, s2))

    r1, r2 = diver_reference(x, docs1, docs2, W, aggr_w, aggr_b, Q, V, M)
    assert s1.shape == (B, M) and s2.shape == (B, M)
    assert jnp.allclose(s1, r1, atol=1e-4, rtol=1e-4), (s1, r1)
    assert jnp.allclose(s2, r2, atol=1e-4, rtol=1e-4), (s2, r2)

    print("KERNEL_OK")
</pallas_src>

<mosaic_0001>
module attributes {stable_mosaic.version = 11 : i64} {
  func.func @_diver_kernel(%arg0: i32, %arg1: memref<2x2x1xi32, #tpu.memory_space<vmem>>, %arg2: memref<2x8x32xf32, #tpu.memory_space<vmem>>, %arg3: memref<2x32x8xf32, #tpu.memory_space<vmem>>, %arg4: memref<32x128xf32, #tpu.memory_space<vmem>>, %arg5: memref<128x32xf32, #tpu.memory_space<vmem>>, %arg6: memref<32x4xf32, #tpu.memory_space<vmem>>, %arg7: memref<1x1xf32, #tpu.memory_space<vmem>>, %arg8: memref<2x2x4xf32, #tpu.memory_space<vmem>>) attributes {dimension_semantics = [#tpu.dimension_semantics<parallel>], iteration_bounds = array<i64: 1>, scalar_prefetch = 0 : i64, scratch_operands = 0 : i64, tpu.core_type = #tpu.core_type<tc>, window_params = [{transform_indices = @transform_0, window_bounds = array<i64: 2, 2, 1>}, {transform_indices = @transform_1, window_bounds = array<i64: 2, 8, 32>}, {transform_indices = @transform_2, window_bounds = array<i64: 2, 32, 8>}, {pipeline_mode = #tpu.pipeline_mode<synchronous>, transform_indices = @transform_3, window_bounds = array<i64: 32, 128>}, {pipeline_mode = #tpu.pipeline_mode<synchronous>, transform_indices = @transform_4, window_bounds = array<i64: 128, 32>}, {pipeline_mode = #tpu.pipeline_mode<synchronous>, transform_indices = @transform_5, window_bounds = array<i64: 32, 4>}, {pipeline_mode = #tpu.pipeline_mode<synchronous>, transform_indices = @transform_6, window_bounds = array<i64: 1, 1>}, {transform_indices = @transform_7, window_bounds = array<i64: 2, 2, 4>}]} {
    %c0 = arith.constant 0 : index
    %c0_0 = arith.constant 0 : index
    %0 = vector.load %arg4[%c0, %c0_0] : memref<32x128xf32, #tpu.memory_space<vmem>>, vector<32x128xf32>
    %c0_1 = arith.constant 0 : index
    %c0_2 = arith.constant 0 : index
    %1 = vector.load %arg5[%c0_1, %c0_2] : memref<128x32xf32, #tpu.memory_space<vmem>>, vector<128x32xf32>
    %c0_3 = arith.constant 0 : index
    %c0_4 = arith.constant 0 : index
    %2 = vector.load %arg6[%c0_3, %c0_4] : memref<32x4xf32, #tpu.memory_space<vmem>>, vector<32x4xf32>
    %c0_5 = arith.constant 0 : index
    %c0_6 = arith.constant 0 : index
    %3 = vector.load %arg7[%c0_5, %c0_6] : memref<1x1xf32, #tpu.memory_space<vmem>>, vector<1x1xf32>
    %c0_7 = arith.constant 0 : index
    %c0_8 = arith.constant 0 : index
    %c0_9 = arith.constant 0 : index
    %4 = vector.load %arg2[%c0_7, %c0_8, %c0_9] : memref<2x8x32xf32, #tpu.memory_space<vmem>>, vector<2x8x32xf32>
    %5 = vector.shape_cast %4 : vector<2x8x32xf32> to vector<16x32xf32>
    %cst = arith.constant dense<0.000000e+00> : vector<16x128xf32>
    %6 = tpu.matmul %5, %0, %cst {dimension_numbers = #tpu.dot_dimension_numbers<[1], [0], [0], [1], [0, 0, 1, 1], [], []>} : vector<16x32xf32>, vector<32x128xf32>, vector<16x128xf32> -> vector<16x128xf32>
    %7 = vector.extract_strided_slice %6 {offsets = [0, 0], sizes = [8, 128], strides = [1, 1]} : vector<16x128xf32> to vector<8x128xf32>
    %c0_10 = arith.constant 0 : index
    %c0_11 = arith.constant 0 : index
    %c0_12 = arith.constant 0 : index
    %8 = vector.load %arg3[%c0_10, %c0_11, %c0_12] : memref<2x32x8xf32, #tpu.memory_space<vmem>>, vector<1x32x8xf32>
    %9 = vector.shape_cast %8 : vector<1x32x8xf32> to vector<32x8xf32>
    %10 = tpu.concatenate %9, %9, %9, %9 in 1 : vector<32x8xf32>, vector<32x8xf32>, vector<32x8xf32>, vector<32x8xf32> -> vector<32x32xf32>
    %11 = tpu.concatenate %10, %10, %10, %10 in 0 : vector<32x32xf32>, vector<32x32xf32>, vector<32x32xf32>, vector<32x32xf32> -> vector<128x32xf32>
    %12 = arith.mulf %11, %1 : vector<128x32xf32>
    %cst_13 = arith.constant dense<0.000000e+00> : vector<8x32xf32>
    %13 = tpu.matmul %7, %12, %cst_13 {dimension_numbers = #tpu.dot_dimension_numbers<[1], [0], [0], [1], [0, 0, 1, 1], [], []>} : vector<8x128xf32>, vector<128x32xf32>, vector<8x32xf32> -> vector<8x32xf32>
    %cst_14 = arith.constant dense<0xFF800000> : vector<32xf32>
    %14 = vector.multi_reduction <maximumf>, %13, %cst_14 [0] : vector<8x32xf32> to vector<32xf32>
    %15 = vector.shape_cast %14 : vector<32xf32> to vector<1x32xf32>
    %16 = vector.broadcast %15 : vector<1x32xf32> to vector<8x32xf32>
    %17 = arith.subf %13, %16 : vector<8x32xf32>
    %18 = math.exp %17 : vector<8x32xf32>
    %cst_15 = arith.constant dense<0.000000e+00> : vector<32xf32>
    %19 = vector.multi_reduction <add>, %18, %cst_15 [0] : vector<8x32xf32> to vector<32xf32>
    %20 = vector.shape_cast %19 : vector<32xf32> to vector<1x32xf32>
    %21 = tpu.iota {dimensions = array<i32: 1>} : vector<2x8xi32>
    %c0_16 = arith.constant 0 : index
    %c0_17 = arith.constant 0 : index
    %c0_18 = arith.constant 0 : index
    %22 = vector.load %arg1[%c0_16, %c0_17, %c0_18] : memref<2x2x1xi32, #tpu.memory_space<vmem>>, vector<1x2x1xi32>
    %23 = vector.shape_cast %22 : vector<1x2x1xi32> to vector<2x1xi32>
    %24 = vector.broadcast %23 : vector<2x1xi32> to vector<2x8xi32>
    %25 = arith.cmpi eq, %21, %24 : vector<2x8xi32>
    %26 = arith.extui %25 : vector<2x8xi1> to vector<2x8xi32>
    %27 = arith.sitofp %26 : vector<2x8xi32> to vector<2x8xf32>
    %cst_19 = arith.constant dense<0.000000e+00> : vector<2x32xf32>
    %28 = tpu.matmul %27, %18, %cst_19 {dimension_numbers = #tpu.dot_dimension_numbers<[1], [0], [0], [1], [0, 0, 1, 1], [], []>} : vector<2x8xf32>, vector<8x32xf32>, vector<2x32xf32> -> vector<2x32xf32>
    %29 = vector.broadcast %20 : vector<1x32xf32> to vector<2x32xf32>
    %30 = arith.divf %28, %29 : vector<2x32xf32>
    %cst_20 = arith.constant dense<0.000000e+00> : vector<2x4xf32>
    %31 = tpu.matmul %30, %2, %cst_20 {dimension_numbers = #tpu.dot_dimension_numbers<[1], [0], [0], [1], [0, 0, 1, 1], [], []>} : vector<2x32xf32>, vector<32x4xf32>, vector<2x4xf32> -> vector<2x4xf32>
    %32 = vector.broadcast %3 : vector<1x1xf32> to vector<2x4xf32>
    %33 = arith.addf %31, %32 : vector<2x4xf32>
    %34 = math.tanh %33 : vector<2x4xf32>
    %cst_21 = arith.constant 1.000000e+00 : f32
    %35 = vector.broadcast %cst_21 : f32 to vector<2x4xf32>
    %36 = arith.subf %35, %34 : vector<2x4xf32>
    %c0_22 = arith.constant 0 : index
    %c0_23 = arith.constant 0 : index
    %c0_24 = arith.constant 0 : index
    %37 = vector.load %arg8[%c0_22, %c0_23, %c0_24] : memref<2x2x4xf32, #tpu.memory_space<vmem>>, vector<1x2x4xf32>
    %38 = vector.shape_cast %37 : vector<1x2x4xf32> to vector<2x4xf32>
    %39 = vector.shape_cast %36 : vector<2x4xf32> to vector<1x2x4xf32>
    tpu.vector_store %arg8[%c0_22, %c0_23, %c0_24], %39 {strides = array<i32>} : memref<2x2x4xf32, #tpu.memory_space<vmem>>, vector<1x2x4xf32>,
    %40 = vector.extract_strided_slice %6 {offsets = [8, 0], sizes = [8, 128], strides = [1, 1]} : vector<16x128xf32> to vector<8x128xf32>
    %c1 = arith.constant 1 : index
    %c0_25 = arith.constant 0 : index
    %c0_26 = arith.constant 0 : index
    %41 = vector.load %arg3[%c1, %c0_25, %c0_26] : memref<2x32x8xf32, #tpu.memory_space<vmem>>, vector<1x32x8xf32>
    %42 = vector.shape_cast %41 : vector<1x32x8xf32> to vector<32x8xf32>
    %43 = tpu.concatenate %42, %42, %42, %42 in 1 : vector<32x8xf32>, vector<32x8xf32>, vector<32x8xf32>, vector<32x8xf32> -> vector<32x32xf32>
    %44 = tpu.concatenate %43, %43, %43, %43 in 0 : vector<32x32xf32>, vector<32x32xf32>, vector<32x32xf32>, vector<32x32xf32> -> vector<128x32xf32>
    %45 = arith.mulf %44, %1 : vector<128x32xf32>
    %cst_27 = arith.constant dense<0.000000e+00> : vector<8x32xf32>
    %46 = tpu.matmul %40, %45, %cst_27 {dimension_numbers = #tpu.dot_dimension_numbers<[1], [0], [0], [1], [0, 0, 1, 1], [], []>} : vector<8x128xf32>, vector<128x32xf32>, vector<8x32xf32> -> vector<8x32xf32>
    %cst_28 = arith.constant dense<0xFF800000> : vector<32xf32>
    %47 = vector.multi_reduction <maximumf>, %46, %cst_28 [0] : vector<8x32xf32> to vector<32xf32>
    %48 = vector.shape_cast %47 : vector<32xf32> to vector<1x32xf32>
    %49 = vector.broadcast %48 : vector<1x32xf32> to vector<8x32xf32>
    %50 = arith.subf %46, %49 : vector<8x32xf32>
    %51 = math.exp %50 : vector<8x32xf32>
    %cst_29 = arith.constant dense<0.000000e+00> : vector<32xf32>
    %52 = vector.multi_reduction <add>, %51, %cst_29 [0] : vector<8x32xf32> to vector<32xf32>
    %53 = vector.shape_cast %52 : vector<32xf32> to vector<1x32xf32>
    %54 = tpu.iota {dimensions = array<i32: 1>} : vector<2x8xi32>
    %c1_30 = arith.constant 1 : index
    %c0_31 = arith.constant 0 : index
    %c0_32 = arith.constant 0 : index
    %55 = vector.load %arg1[%c1_30, %c0_31, %c0_32] : memref<2x2x1xi32, #tpu.memory_space<vmem>>, vector<1x2x1xi32>
    %56 = vector.shape_cast %55 : vector<1x2x1xi32> to vector<2x1xi32>
    %57 = vector.broadcast %56 : vector<2x1xi32> to vector<2x8xi32>
    %58 = arith.cmpi eq, %54, %57 : vector<2x8xi32>
    %59 = arith.extui %58 : vector<2x8xi1> to vector<2x8xi32>
    %60 = arith.sitofp %59 : vector<2x8xi32> to vector<2x8xf32>
    %cst_33 = arith.constant dense<0.000000e+00> : vector<2x32xf32>
    %61 = tpu.matmul %60, %51, %cst_33 {dimension_numbers = #tpu.dot_dimension_numbers<[1], [0], [0], [1], [0, 0, 1, 1], [], []>} : vector<2x8xf32>, vector<8x32xf32>, vector<2x32xf32> -> vector<2x32xf32>
    %62 = vector.broadcast %53 : vector<1x32xf32> to vector<2x32xf32>
    %63 = arith.divf %61, %62 : vector<2x32xf32>
    %cst_34 = arith.constant dense<0.000000e+00> : vector<2x4xf32>
    %64 = tpu.matmul %63, %2, %cst_34 {dimension_numbers = #tpu.dot_dimension_numbers<[1], [0], [0], [1], [0, 0, 1, 1], [], []>} : vector<2x32xf32>, vector<32x4xf32>, vector<2x4xf32> -> vector<2x4xf32>
    %65 = vector.broadcast %3 : vector<1x1xf32> to vector<2x4xf32>
    %66 = arith.addf %64, %65 : vector<2x4xf32>
    %67 = math.tanh %66 : vector<2x4xf32>
    %cst_35 = arith.constant 1.000000e+00 : f32
    %68 = vector.broadcast %cst_35 : f32 to vector<2x4xf32>
    %69 = arith.subf %68, %67 : vector<2x4xf32>
    %c1_36 = arith.constant 1 : index
    %c0_37 = arith.constant 0 : index
    %c0_38 = arith.constant 0 : index
    %70 = vector.load %arg8[%c1_36, %c0_37, %c0_38] : memref<2x2x4xf32, #tpu.memory_space<vmem>>, vector<1x2x4xf32>
    %71 = vector.shape_cast %70 : vector<1x2x4xf32> to vector<2x4xf32>
    %72 = vector.shape_cast %69 : vector<2x4xf32> to vector<1x2x4xf32>
    tpu.vector_store %arg8[%c1_36, %c0_37, %c0_38], %72 {strides = array<i32>} : memref<2x2x4xf32, #tpu.memory_space<vmem>>, vector<1x2x4xf32>,
    return
  }
  func.func @transform_0(%arg0: i32) -> (i32, i32, i32) {
    %c0_i32 = arith.constant 0 : i32
    %c0_i32_0 = arith.constant 0 : i32
    %c0_i32_1 = arith.constant 0 : i32
    return %arg0, %c0_i32, %c0_i32_0 : i32, i32, i32
  }
  func.func @transform_1(%arg0: i32) -> (i32, i32, i32) {
    %c0_i32 = arith.constant 0 : i32
    %c0_i32_0 = arith.constant 0 : i32
    %c0_i32_1 = arith.constant 0 : i32
    return %arg0, %c0_i32, %c0_i32_0 : i32, i32, i32
  }
  func.func @transform_2(%arg0: i32) -> (i32, i32, i32) {
    %c0_i32 = arith.constant 0 : i32
    %c0_i32_0 = arith.constant 0 : i32
    %c0_i32_1 = arith.constant 0 : i32
    return %arg0, %c0_i32, %c0_i32_0 : i32, i32, i32
  }
  func.func @transform_3(%arg0: i32) -> (i32, i32) {
    %c0_i32 = arith.constant 0 : i32
    %c0_i32_0 = arith.constant 0 : i32
    %c0_i32_1 = arith.constant 0 : i32
    return %c0_i32, %c0_i32_0 : i32, i32
  }
  func.func @transform_4(%arg0: i32) -> (i32, i32) {
    %c0_i32 = arith.constant 0 : i32
    %c0_i32_0 = arith.constant 0 : i32
    %c0_i32_1 = arith.constant 0 : i32
    return %c0_i32, %c0_i32_0 : i32, i32
  }
  func.func @transform_5(%arg0: i32) -> (i32, i32) {
    %c0_i32 = arith.constant 0 : i32
    %c0_i32_0 = arith.constant 0 : i32
    %c0_i32_1 = arith.constant 0 : i32
    return %c0_i32, %c0_i32_0 : i32, i32
  }
  func.func @transform_6(%arg0: i32) -> (i32, i32) {
    %c0_i32 = arith.constant 0 : i32
    %c0_i32_0 = arith.constant 0 : i32
    %c0_i32_1 = arith.constant 0 : i32
    return %c0_i32, %c0_i32_0 : i32, i32
  }
  func.func @transform_7(%arg0: i32) -> (i32, i32, i32) {
    %c0_i32 = arith.constant 0 : i32
    %c0_i32_0 = arith.constant 0 : i32
    %c0_i32_1 = arith.constant 0 : i32
    return %arg0, %c0_i32, %c0_i32_0 : i32, i32, i32
  }
}

</mosaic_0001>

<bundles_post_ra>
// kernel: tpu_custom_call.1
= control target key start
LH: loop header
LB: loop body
LE: loop exit
PB: predicated region body
PF: predicated region fallthrough
CT: control target
= control target key end

     0   :  { %s1463_s0 = inlined_call_operand.vmem [shape: s32[2,2,1], index: 0, kind: input, shape index: {}]   ;;  %s1464_s1 = inlined_call_operand.vmem [shape: f32[2,8,32], index: 1, kind: input, shape index: {}]   ;;  %s1465_s2 = inlined_call_operand.vmem [shape: f32[2,32,8], index: 2, kind: input, shape index: {}]   ;;  %s1466_s3 = inlined_call_operand.vmem [shape: f32[32,128], index: 3, kind: input, shape index: {}]   ;;  %s1467_s4 = inlined_call_operand.vmem [shape: f32[128,32], index: 4, kind: input, shape index: {}]   ;;  %s1468_s5 = inlined_call_operand.vmem [shape: f32[32,4], index: 5, kind: input, shape index: {}]   ;;  %s1469_s6 = inlined_call_operand.<no memory space> [shape: f32[1,1], index: 6, kind: input, shape index: {}]   ;;  %s1470_s7 = inlined_call_operand.hbm [shape: f32[2,2,4], index: 7, kind: output, shape index: {}]  }
   0x1   :  { %v12_v0 = vstv %s1469_s6 }
   0x2   :  { %13 = vst [vmem:[#allocation2] sm:$0x1] %v12_v0 }
   0x3   :  { %v29_v1 = vld [vmem:[%s1466_s3] sm:$0xff]  ;;  %v30_v2 = vld [vmem:[%s1466_s3 + $0x8] sm:$0xff]  ;;  %v31_v3 = vld [vmem:[%s1466_s3 + $0x10] sm:$0xff]  ;;  %vm56_vm0 = vcmask 261120   ;;  %s1103_s14 = smov 16   ;;  %s1104_s15 = smov 8  }
   0x4   :  { %v987_v4 = vpack.c.bf16 %v30_v2, %v29_v1  ;;  %v32_v5 = vld [vmem:[%s1466_s3 + $0x18] sm:$0xff]  ;;  %v54_v6 = vld [vmem:[%s1464_s1] sm:$0xff]  ;;  %v139_v9 = vld [vmem:[%s1465_s2 + $0x8] sm:$0xff] }
   0x5   :  { %v991_v7 = vpack.c.bf16 %v32_v5, %v31_v3  ;;  %882 = vmatprep.mubr.msk.f32.mxu0 %vm56_vm0, %v54_v6  ;;  %v138_v8 = vld [vmem:[%s1465_s2] sm:$0xff] }
   0x6   :  { %988 = vmatprep.subr.bf16.mxu0 %v987_v4  ;;  %158 = vrot.lane.b32.xlu1 %v138_v8, %s1103_s14 }
   0x7   :  { %990 = vmatpush3.bf16.msra.mxu0 %v987_v4  ;;  %146 = vrot.lane.b32.xlu0 %v138_v8, %s1104_s15 }
   0x8   :  { %992 = vmatprep.subr.bf16.mxu0 %v991_v7 }
   0x9   :  { %14 = vsyncpa [#allocation4], 0  ;;  %v55_v10 = vld [vmem:[%s1464_s1 + $0x8] sm:$0xff]  ;;  %s1105_s19 = smov 24   ;;  %v141_v11 = vld [vmem:[%s1465_s2 + $0x18] sm:$0xff]  ;;  %v1106_v13 = vmov 0.0|0.0  }
   0xa   :  { %160 = vrot.lane.b32.xlu1 %v139_v9, %s1103_s14  ;;  %v140_v12 = vld [vmem:[%s1465_s2 + $0x10] sm:$0xff]  ;;  %995 = vmatprep.subr.bf16.mxu1 %v1106_v13  ;;  %vm1107_vm1 = vmmov 0   ;;  %v1108_v14 = vmov 0.0   ;;  %v302_v15 = vld [vmem:[%s1463_s0] sm:$0x3]  ;;  %v1109_v17 = vmov 0  }
   0xb   :  { %994 = vmatpush3.bf16.msra.mxu0 %v991_v7  ;;  %148 = vrot.lane.b32.xlu0 %v139_v9, %s1104_s15  ;;  %v1212_v16 = vld [vmem:[%s1465_s2 + $0x20] sm:$0xff]  ;;  %v1223_v18 = vld [vmem:[%s1465_s2 + $0x30] sm:$0xff]  ;;  %vm182_vm2 = vcmask 64512   ;;  %vm187_vm3 = vcmask 130048   ;;  %vm192_vm4 = vcmask 195584   ;;  %v1247_v32 = vld [vmem:[%s1467_s4 + $0x8] sm:$0xff] }
   0xc   :  { %1019 = vmatprep.subr.bf16.mxu0 %v1106_v13  ;;  %917 = vmatprep.mubr.msk.f32.mxu1 %vm1107_vm1, %v1108_v14  ;;  %v816_v21 = vld [vmem:[%s1463_s0 + $0x2] sm:$0x3]  ;;  %v1259_v44 = vld [vmem:[%s1467_s4 + $0x18] sm:$0xff]  ;;  %v1265_v47 = vld [vmem:[%s1467_s4 + $0x28] sm:$0xff]  ;;  %vm468_vm6 = vcmask 25600  }
   0xd   :  { %1065 = vset.pattern.permute.xlu0 %v1109_v17  ;;  %1066 = vset.pattern.permute.xlu1 %v1109_v17  ;;  %v1241_v29 = vld [vmem:[%s1467_s4] sm:$0xff]  ;;  %v1276_v51 = vld [vmem:[%s1467_s4 + $0x10] sm:$0xff]  ;;  %v1286_v57 = vld [vmem:[%s1467_s4 + $0x38] sm:$0xff] }
   0xe   :  { %883 = vmatmul.mubr.msk.f32.vlgmr.msra.gmra.mrb[0].mxu0 %vm56_vm0, %v55_v10  ;;  %172 = vrot.lane.b32.xlu1 %v139_v9, %s1105_s19  ;;  %v1270_v48 = vld [vmem:[%s1467_s4 + $0x20] sm:$0xff]  ;;  %v1291_v58 = vld [vmem:[%s1467_s4 + $0x30] sm:$0xff]  ;;  %v1298_v63 = vld [vmem:[%s1467_s4 + $0x48] sm:$0xff] }
   0xf   :  { %170 = vrot.lane.b32.xlu0 %v138_v8, %s1105_s19  ;;  %933 = vmatprep.mubr.msk.f32.mxu0 %vm1107_vm1, %v1108_v14  ;;  %v1303_v0 = vld [vmem:[%s1467_s4 + $0x40] sm:$0xff]  ;;  %v1311_v4 = vld [vmem:[%s1467_s4 + $0x58] sm:$0xff]  ;;  %v1316_v5 = vld [vmem:[%s1467_s4 + $0x50] sm:$0xff] }
  0x10   :  { %v1329_v10 = vld [vmem:[%s1467_s4 + $0x60] sm:$0xff]  ;;  %v1337_v17 = vld [vmem:[%s1467_s4 + $0x78] sm:$0xff] }
  0x12   :  { %152 = vrot.lane.b32.xlu1 %v141_v11, %s1104_s15 }
  0x13   :  { %150 = vrot.lane.b32.xlu0 %v140_v12, %s1104_s15 }
  0x16   :  { %164 = vrot.lane.b32.xlu1 %v141_v11, %s1103_s14 }
  0x17   :  { %162 = vrot.lane.b32.xlu0 %v140_v12, %s1103_s14 }
  0x1a   :  { %176 = vrot.lane.b32.xlu1 %v141_v11, %s1105_s19 }
  0x1b   :  { %174 = vrot.lane.b32.xlu0 %v140_v12, %s1105_s19 }
  0x1e   :  { %479 = vrot.lane.b32.xlu1 %v1212_v16, %s1104_s15 }
  0x1f   :  { %304 = vperm.xlu0 %1065, %v302_v15  }
  0x23   :  { %491 = vrot.lane.b32.xlu0 %v1212_v16, %s1103_s14 }
  0x27   :  { %503 = vrot.lane.b32.xlu0 %v1212_v16, %s1105_s19 }
  0x2b   :  { %483 = vrot.lane.b32.xlu0 %v1223_v18, %s1104_s15 }
  0x2f   :  { %495 = vrot.lane.b32.xlu0 %v1223_v18, %s1103_s14 }
  0x33   :  { %507 = vrot.lane.b32.xlu0 %v1223_v18, %s1105_s19 }
  0x37   :  { %633 = vperm.xlu0 %1065, %v816_v21  }
  0x78   :  { %v159_v19 = vpop.permute.xlu1 %158 }
  0x79   :  { %v147_v20 = vpop.permute.xlu0 %146 }
  0x7a   :  { %v183_v22 = vsel %vm182_vm2, %v138_v8, %v147_v20 }
  0x7b   :  { %v188_v27 = vsel %vm187_vm3, %v183_v22, %v159_v19  ;;  %v1342_v19 = vld [vmem:[%s1467_s4 + $0x70] sm:$0xff] }
  0x7c   :  { %v161_v23 = vpop.permute.xlu1 %160 }
  0x7d   :  { %v149_v24 = vpop.permute.xlu0 %148 }
  0x7e   :  { %v184_v25 = vsel %vm182_vm2, %v139_v9, %v149_v24  ;;  %v1324_v9 = vld [vmem:[%s1467_s4 + $0x68] sm:$0xff] }
  0x7f   :  { %v189_v26 = vsel %vm187_vm3, %v184_v25, %v161_v23 }
  0x80   :  { %v173_v28 = vpop.permute.xlu1 %172 }
  0x81   :  { %v194_v30 = vsel %vm192_vm4, %v189_v26, %v173_v28  ;;  %v171_v31 = vpop.permute.xlu0 %170  ;;  %v813_v26 = vld [vmem:[%s1465_s2 + $0x28] sm:$0xff] }
  0x82   :  { %v193_v33 = vsel %vm192_vm4, %v188_v27, %v171_v31  ;;  %v198_v36 = vmul.f32 %v194_v30, %v1247_v32  ;;  %v202_v54 = vmul.f32 %v194_v30, %v1265_v47  ;;  %v206_v1 = vmul.f32 %v194_v30, %v1298_v63  ;;  %481 = vrot.lane.b32.xlu1 %v813_v26, %s1104_s15  ;;  %v49_v27 = vld [vmem:[%s1468_s5] sm:$0xff]  ;;  %v50_v28 = vld [vmem:[%s1468_s5 + $0x8] sm:$0xff]  ;;  %v815_v31 = vld [vmem:[%s1465_s2 + $0x38] sm:$0xff]  ;;  %s1110_s2 = smov [#allocation3]  }
  0x83   :  { %v197_v34 = vmul.f32 %v193_v33, %v1241_v29  ;;  %v201_v55 = vmul.f32 %v193_v33, %v1270_v48  ;;  %v205_v2 = vmul.f32 %v193_v33, %v1303_v0 }
  0x84   :  { %v153_v35 = vpop.permute.xlu1 %152 }
  0x85   :  { %v151_v37 = vpop.permute.xlu0 %150  ;;  %v996_v38 = vpack.c.bf16 %v198_v36, %v197_v34  ;;  %v186_v39 = vsel %vm182_vm2, %v141_v11, %v153_v35  ;;  %v1002_v62 = vpack.c.bf16 %v202_v54, %v201_v55  ;;  %v1008_v8 = vpack.c.bf16 %v206_v1, %v205_v2  ;;  %v52_v34 = vld [vmem:[%s1468_s5 + $0x18] sm:$0xff] }
  0x86   :  { %v185_v41 = vsel %vm182_vm2, %v140_v12, %v151_v37  ;;  %v210_v11 = vmul.f32 %v194_v30, %v1324_v9  ;;  %v209_v12 = vmul.f32 %v193_v33, %v1329_v10  ;;  %493 = vrot.lane.b32.xlu1 %v813_v26, %s1103_s14  ;;  %v51_v30 = vld [vmem:[%s1468_s5 + $0x10] sm:$0xff]  ;;  %v1372_v33 = vpack.c.bf16 %v50_v28, %v49_v27  ;;  %s795_s5 = sshll.u32 %s1110_s2, 4  ;;  %s796_s5 = int_to_ptr.vmem [resolvable:$true] %s795_s5 }
  0x87   :  { %997 = vmatpush3.bf16.msra.mxu1 %v996_v38  ;;  %v1378_v35 = vpack.c.bf16 %v52_v34, %v51_v30  ;;  %p1084_p1 = scmp.lt.s32.totalorder %s796_s5, %s796_s5 }
  0x88   :  { %v165_v40 = vpop.permute.xlu1 %164  ;;  %998 = vmatprep.subr.bf16.mxu1 %v1106_v13  ;;  %v1014_v22 = vpack.c.bf16 %v210_v11, %v209_v12  ;;  %1021 = vmatpush3.bf16.msra.mxu0 %v1372_v33 }
  0x89   :  { %v163_v42 = vpop.permute.xlu0 %162  ;;  %v191_v43 = vsel %vm187_vm3, %v186_v39, %v165_v40  ;;  %1022 = vmatprep.subr.bf16.mxu0 %v1106_v13 }
  0x8a   :  { %v190_v45 = vsel %vm187_vm3, %v185_v41, %v163_v42  ;;  %505 = vrot.lane.b32.xlu1 %v813_v26, %s1105_s19 }
  0x8c   :  { %v177_v46 = vpop.permute.xlu1 %176  ;;  %1024 = vmatpush3.bf16.msra.mxu0 %v1378_v35 }
  0x8d   :  { %v196_v49 = vsel %vm192_vm4, %v191_v43, %v177_v46  ;;  %v175_v50 = vpop.permute.xlu0 %174  ;;  %1025 = vmatprep.subr.bf16.mxu0 %v1106_v13 }
  0x8e   :  { %v200_v52 = vmul.f32 %v196_v49, %v1259_v44  ;;  %v195_v53 = vsel %vm192_vm4, %v190_v45, %v175_v50  ;;  %v204_v60 = vmul.f32 %v196_v49, %v1286_v57  ;;  %v208_v6 = vmul.f32 %v196_v49, %v1311_v4  ;;  %485 = vrot.lane.b32.xlu1 %v815_v31, %s1104_s15 }
  0x8f   :  { %v199_v56 = vmul.f32 %v195_v53, %v1276_v51  ;;  %v203_v61 = vmul.f32 %v195_v53, %v1291_v58  ;;  %v207_v7 = vmul.f32 %v195_v53, %v1316_v5  ;;  %v212_v20 = vmul.f32 %v196_v49, %v1337_v17 }
  0x90   :  { %v211_v21 = vmul.f32 %v195_v53, %v1342_v19  ;;  %v300_v50 = vlaneseq }
  0x91   :  { %v999_v59 = vpack.c.bf16 %v200_v52, %v199_v56  ;;  %v1005_v3 = vpack.c.bf16 %v204_v60, %v203_v61  ;;  %v1011_v15 = vpack.c.bf16 %v208_v6, %v207_v7  ;;  %v810_v56 = vld [vmem:[#allocation2] ss:$0 sm:$0xff] }
  0x92   :  { %v1017_v23 = vpack.c.bf16 %v212_v20, %v211_v21  ;;  %497 = vrot.lane.b32.xlu1 %v815_v31, %s1103_s14  ;;  %v1387_v52 = vand.u32 127, %v300_v50  ;;  %s1079_s14 = scalar_lea.vmem %s796_s5, 64 }
  0x93   :  { %1000 = vmatpush3.bf16.msra.mxu1 %v999_v59  ;;  %v480_v59 = vpop.permute.xlu1 %479  ;;  %p1080_p0 = scmp.ne.s32.totalorder %s796_s5, %s1079_s14  ;;  %p1085_p2 = scmp.lt.s32.totalorder %s1079_s14, %s1079_s14 }
  0x94   :  { %1001 = vmatprep.subr.bf16.mxu1 %v1106_v13 }
  0x95   :  { %p1086_p3 = por %p1085_p2, %p1084_p1 }
  0x96   :  { %509 = vrot.lane.b32.xlu1 %v815_v31, %s1105_s19 }
  0x97   :  { %1003 = vmatpush3.bf16.msra.mxu1 %v1002_v62  ;;  %p1087_p4 = pnand %p1086_p3, %p1080_p0 }
  0x98   :  { %1004 = vmatprep.subr.bf16.mxu1 %v1106_v13 }
  0x9a   :  { %390 = vperm.xlu1 %1066, %v810_v56  }
  0x9b   :  { %1006 = vmatpush3.bf16.msra.mxu1 %v1005_v3 }
  0x9c   :  { %1007 = vmatprep.subr.bf16.mxu1 %v1106_v13 }
  0x9e   :  { %v305_v53 = vpop.permute.xlu0 %304 }
  0x9f   :  { %1009 = vmatpush3.bf16.msra.mxu1 %v1008_v8  ;;  %vm306_vm5 = vcmp.eq.s32.totalorder %v1387_v52, %v305_v53 }
  0xa0   :  { %1010 = vmatprep.subr.bf16.mxu1 %v1106_v13  ;;  %v808_v54 = vsel %vm306_vm5, 1.0, %v1108_v14 }
  0xa2   :  { %v492_v2 = vpop.permute.xlu0 %491 }
  0xa3   :  { %1012 = vmatpush3.bf16.msra.mxu1 %v1011_v15 }
  0xa4   :  { %1013 = vmatprep.subr.bf16.mxu1 %v1106_v13 }
  0xa6   :  { %v504_v8 = vpop.permute.xlu0 %503 }
  0xa7   :  { %1015 = vmatpush3.bf16.msra.mxu1 %v1014_v22  ;;  %v515_v22 = vsel %vm182_vm2, %v1212_v16, %v480_v59 }
  0xa8   :  { %1016 = vmatprep.subr.bf16.mxu1 %v1106_v13  ;;  %v519_v28 = vsel %vm187_vm3, %v515_v22, %v492_v2 }
  0xaa   :  { %v484_v20 = vpop.permute.xlu0 %483 }
  0xab   :  { %1018 = vmatpush3.bf16.msra.mxu1 %v1017_v23  ;;  %v517_v34 = vsel %vm182_vm2, %v1223_v18, %v484_v20 }
  0xac   :  { %920 = vmatprep.subr.mxu1 %v1108_v14 }
  0xae   :  { %v496_v27 = vpop.permute.xlu0 %495 }
  0xaf   :  { %v521_v16 = vsel %vm187_vm3, %v517_v34, %v496_v27 }
  0xe1   :  { %v1350_v24 = vpop.f32.mrb[0].mxu0 }
  0xe2   :  { %v129_v25 = vpop.f32.mrb[1].mxu0 }
  0xe3   :  { %918 = vmatmul.mubr.f32.vlgmr.msra.gmra.mrb[0].mxu1 %v129_v25 }
  0xe4   :  { %922 = vmatprep.mubr.msk.f32.mxu1 %vm1107_vm1, %v1108_v14 }
  0xf4   :  { %v482_v62 = vpop.permute.xlu1 %481 }
  0xf5   :  { %v516_v23 = vsel %vm182_vm2, %v813_v26, %v482_v62 }
  0xf8   :  { %v494_v3 = vpop.permute.xlu1 %493 }
  0xf9   :  { %v520_v30 = vsel %vm187_vm3, %v516_v23, %v494_v3 }
  0xfc   :  { %v506_v11 = vpop.permute.xlu1 %505 }
 0x100   :  { %v486_v15 = vpop.permute.xlu1 %485 }
 0x104   :  { %v498_v25 = vpop.permute.xlu1 %497 }
 0x1b6   :  { %v279_v36 = vpop.f32.mrb[0].mxu1 }
 0x1b7   :  { %v283_v37 = vsel %vm56_vm0, %v279_v36, -inf  ;;  %v919_v38 = vpop.f32.mrb[1].mxu1 }
 0x1b8   :  { %v284_v39 = vrot.slane %v283_v37, 4  ;;  %v524_v38 = vsel %vm192_vm4, %v520_v30, %v506_v11 }
 0x1b9   :  { %v536_v59 = vmul.f32 %v524_v38, %v1298_v63 }
 0x1ba   :  { %v285_v40 = vmax.f32 %v283_v37, %v284_v39  ;;  %v523_v37 = vsel %vm192_vm4, %v519_v28, %v504_v8  ;;  %v510_v39 = vpop.permute.xlu1 %509 }
 0x1bc   :  { %v286_v41 = vrot.slane %v285_v40, 2 }
 0x1be   :  { %v287_v42 = vmax.f32 %v285_v40, %v286_v41  ;;  %v508_v40 = vpop.permute.xlu0 %507  ;;  %v528_v41 = vmul.f32 %v524_v38, %v1247_v32 }
 0x1c0   :  { %v288_v43 = vrot.slane %v287_v42, 1 }
 0x1c2   :  { %v289_v45 = vmax.f32 %v287_v42, %v288_v43  ;;  %v527_v42 = vmul.f32 %v523_v37, %v1241_v29  ;;  %v525_v43 = vsel %vm192_vm4, %v521_v16, %v508_v40  ;;  %v532_v29 = vmul.f32 %v524_v38, %v1265_v47 }
 0x1c3   :  { %v529_v50 = vmul.f32 %v525_v43, %v1276_v51  ;;  %v533_v51 = vmul.f32 %v525_v43, %v1291_v58  ;;  %v537_v47 = vmul.f32 %v525_v43, %v1316_v5  ;;  %v541_v63 = vmul.f32 %v525_v43, %v1342_v19  ;;  %v391_v5 = vpop.permute.xlu1 %390 }
 0x1c4   :  { %v290_v46 = vsub.f32 %v279_v36, %v289_v45  ;;  %v518_v36 = vsel %vm182_vm2, %v815_v31, %v486_v15 }
 0x1c5   :  { %v522_v26 = vsel %vm187_vm3, %v518_v36, %v498_v25  ;;  %v634_v25 = vpop.permute.xlu0 %633 }
 0x1c6   :  { %v291_v49 = vmul.f32 1.442695, %v290_v46  ;;  %v526_v18 = vsel %vm192_vm4, %v522_v26, %v510_v39  ;;  %vm635_vm7 = vcmp.eq.s32.totalorder %v1387_v52, %v634_v25 }
 0x1c7   :  { %v530_v53 = vmul.f32 %v526_v18, %v1259_v44  ;;  %v534_v44 = vmul.f32 %v526_v18, %v1286_v57  ;;  %v540_v57 = vmul.f32 %v524_v38, %v1324_v9  ;;  %v817_v28 = vsel %vm635_vm7, 1.0, %v1108_v14 }
 0x1c8   :  { %1067 = vpow2.f32 %v291_v49 }
 0x1c9   :  { %v1029_v32 = vpack.c.bf16 %v530_v53, %v529_v50 }
 0x1d2   :  { %v1068_v55 = vpop.eup %1067 }
 0x1d3   :  { %921 = vmatpush3.msra.mxu1 %v1068_v55  ;;  %v293_v60 = vsel %vm56_vm0, %v1068_v55, 0.0  ;;  %v531_v55 = vmul.f32 %v523_v37, %v1270_v48  ;;  %v538_v48 = vmul.f32 %v526_v18, %v1311_v4 }
 0x1d4   :  { %923 = vmatmul.mubr.msk.f32.vlgmr.msra.gmra.mrb[2].mxu1 %vm182_vm2, %v808_v54  ;;  %971 = vmatprep.subr.mxu1 %v1108_v14  ;;  %v294_v61 = vrot.slane %v293_v60, 4  ;;  %v1026_v54 = vpack.c.bf16 %v528_v41, %v527_v42 }
 0x1d5   :  { %973 = vmatprep.mubr.msk.f32.mxu1 %vm1107_vm1, %v1108_v14  ;;  %v1032_v56 = vpack.c.bf16 %v532_v29, %v531_v55  ;;  %v1041_v58 = vpack.c.bf16 %v538_v48, %v537_v47 }
 0x1d6   :  { %v295_v1 = vadd.f32 %v294_v61, %v293_v60  ;;  %v1035_v60 = vpack.c.bf16 %v534_v44, %v533_v51  ;;  %v535_v61 = vmul.f32 %v523_v37, %v1303_v0  ;;  %v542_v0 = vmul.f32 %v526_v18, %v1337_v17 }
 0x1d8   :  { %v296_v6 = vrot.slane %v295_v1, 2  ;;  %v1038_v62 = vpack.c.bf16 %v536_v59, %v535_v61  ;;  %v1047_v4 = vpack.c.bf16 %v542_v0, %v541_v63 }
 0x1da   :  { %v297_v7 = vadd.f32 %v296_v6, %v295_v1  ;;  %v539_v1 = vmul.f32 %v523_v37, %v1329_v10 }
 0x1dc   :  { %v298_v12 = vrot.slane %v297_v7, 1  ;;  %v1044_v2 = vpack.c.bf16 %v540_v57, %v539_v1 }
 0x1de   :  { %v299_v21 = vadd.f32 %v298_v12, %v297_v7 }
 0x1e0   :  { %1069 = vrcp.f32 %v299_v21 }
 0x1ea   :  { %v1070_v45 = vpop.eup %1069 }
 0x2a7   :  { %v378_v31 = vpop.f32.mrb[2].mxu1 }
 0x2a8   :  { %v383_v46 = vmul.f32 %v1070_v45, %v378_v31  ;;  %v924_v49 = vpop.f32.mrb[3].mxu1 }
 0x2aa   :  { %934 = vmatmul.mubr.msk.f32.vlgmr.msra.gmra.mrb[2].mxu0 %vm56_vm0, %v383_v46 }
 0x2ab   :  { %1027 = vmatpush3.bf16.msra.mxu0 %v1026_v54  ;;  %968 = vmatprep.mubr.msk.f32.mxu0 %vm1107_vm1, %v1108_v14 }
 0x2ac   :  { %1028 = vmatprep.subr.bf16.mxu0 %v1106_v13 }
 0x2af   :  { %1030 = vmatpush3.bf16.msra.mxu0 %v1029_v32 }
 0x2b0   :  { %1031 = vmatprep.subr.bf16.mxu0 %v1106_v13 }
 0x2b3   :  { %1033 = vmatpush3.bf16.msra.mxu0 %v1032_v56 }
 0x2b4   :  { %1034 = vmatprep.subr.bf16.mxu0 %v1106_v13 }
 0x2b7   :  { %1036 = vmatpush3.bf16.msra.mxu0 %v1035_v60 }
 0x2b8   :  { %1037 = vmatprep.subr.bf16.mxu0 %v1106_v13 }
 0x2bb   :  { %1039 = vmatpush3.bf16.msra.mxu0 %v1038_v62 }
 0x2bc   :  { %1040 = vmatprep.subr.bf16.mxu0 %v1106_v13 }
 0x2bf   :  { %1042 = vmatpush3.bf16.msra.mxu0 %v1041_v58 }
 0x2c0   :  { %1043 = vmatprep.subr.bf16.mxu0 %v1106_v13 }
 0x2c3   :  { %1045 = vmatpush3.bf16.msra.mxu0 %v1044_v2 }
 0x2c4   :  { %1046 = vmatprep.subr.bf16.mxu0 %v1106_v13 }
 0x2c7   :  { %1048 = vmatpush3.bf16.msra.mxu0 %v1047_v4 }
 0x2ca   :  { %969 = vmatmul.mubr.f32.vlgmr.msra.gmra.mrb[4].mxu0 %v1350_v24 }
 0x37d   :  { %v462_v9 = vpop.f32.mrb[2].mxu0 }
 0x37e   :  { %v463_v3 = vadd.f32 %v462_v9, %v391_v5  ;;  %v935_v6 = vpop.f32.mrb[3].mxu0 }
 0x380   :  { %1071 = vtanh.f32 %v463_v3 }
 0x38a   :  { %v1072_v10 = vpop.eup %1071 }
 0x38b   :  { %v467_v7 = vsub.f32 1.0, %v1072_v10 }
 0x38d   :  { %469 = vst.msk [vmem:[#allocation3] sm:$0x3] %vm468_vm6, %v467_v7 }
 0x39d   :  { %v609_v19 = vpop.f32.mrb[4].mxu0 }
 0x39e   :  { %v613_v17 = vsel %vm56_vm0, %v609_v19, -inf  ;;  %v970_v8 = vpop.f32.mrb[5].mxu0 }
 0x39f   :  { %v614_v11 = vrot.slane %v613_v17, 4 }
 0x3a1   :  { %v615_v12 = vmax.f32 %v613_v17, %v614_v11 }
 0x3a3   :  { %v616_v15 = vrot.slane %v615_v12, 2 }
 0x3a5   :  { %v617_v20 = vmax.f32 %v615_v12, %v616_v15 }
 0x3a7   :  { %v618_v21 = vrot.slane %v617_v20, 1 }
 0x3a9   :  { %v619_v24 = vmax.f32 %v617_v20, %v618_v21 }
 0x3ab   :  { %v620_v22 = vsub.f32 %v609_v19, %v619_v24 }
 0x3ad   :  { %v621_v23 = vmul.f32 1.442695, %v620_v22 }
 0x3af   :  { %1073 = vpow2.f32 %v621_v23 }
 0x3b9   :  { %v1074_v27 = vpop.eup %1073 }
 0x3ba   :  { %972 = vmatpush3.msra.mxu1 %v1074_v27  ;;  %v623_v30 = vsel %vm56_vm0, %v1074_v27, 0.0 }
 0x3bb   :  { %974 = vmatmul.mubr.msk.f32.vlgmr.msra.gmra.mrb[4].mxu1 %vm182_vm2, %v817_v28  ;;  %1049 = vmatprep.subr.bf16.mxu1 %v1106_v13  ;;  %v624_v52 = vrot.slane %v623_v30, 4 }
 0x3bc   :  { %1051 = vmatpush3.bf16.msra.mxu1 %v1372_v33  ;;  %984 = vmatprep.mubr.msk.f32.mxu1 %vm1107_vm1, %v1108_v14 }
 0x3bd   :  { %1052 = vmatprep.subr.bf16.mxu1 %v1106_v13  ;;  %v625_v34 = vadd.f32 %v624_v52, %v623_v30 }
 0x3bf   :  { %v626_v36 = vrot.slane %v625_v34, 2 }
 0x3c0   :  { %1054 = vmatpush3.bf16.msra.mxu1 %v1378_v35 }
 0x3c1   :  { %v627_v37 = vadd.f32 %v626_v36, %v625_v34 }
 0x3c3   :  { %v628_v38 = vrot.slane %v627_v37, 1 }
 0x3c5   :  { %v629_v16 = vadd.f32 %v628_v38, %v627_v37 }
 0x3c7   :  { %1075 = vrcp.f32 %v629_v16 }
 0x3d1   :  { %v1076_v26 = vpop.eup %1075 }
 0x48e   :  { %v707_v39 = vpop.f32.mrb[4].mxu1 }
 0x48f   :  { %v712_v40 = vmul.f32 %v1076_v26, %v707_v39  ;;  %v975_v33 = vpop.f32.mrb[5].mxu1 }
 0x491   :  { %985 = vmatmul.mubr.msk.f32.vlgmr.msra.gmra.mrb[6].mxu1 %vm56_vm0, %v712_v40 }
 0x564   :  { %v782_v14 = vpop.f32.mrb[6].mxu1 }
 0x565   :  { %v783_v41 = vadd.f32 %v782_v14, %v391_v5  ;;  %v986_v13 = vpop.f32.mrb[7].mxu1 }
 0x567   :  { %1077 = vtanh.f32 %v783_v41 }
 0x571   :  { %v1078_v35 = vpop.eup %1077 }
 0x572   :  { %v787_v42 = vsub.f32 1.0, %v1078_v35 }
 0x574   :  { %789 = vst.msk [vmem:[#allocation3 + $0x2] sm:$0x3] %vm468_vm6, %v787_v42 }
 0x575   :  { %1090 = shalt.err (!%p1087_p4)
}
 0x576   :  { %s1091_s26 = scalar_lea.hbm %s1470_s7, 64 }
 0x577   :  { %p1092_p5 = scmp.ne.s32.totalorder %s1470_s7, %s1091_s26  ;;  %p1095_p6 = scmp.lt.u32.totalorder %s1091_s26, %s1470_s7 }
 0x579   :  { %p1097_p7 = pnand %p1095_p6, %p1092_p5 }
 0x57b   :  { %1100 = shalt.err (!%p1097_p7)
}
 0x57c   :  { %s1111_s8 = smov 32   ;;  %s1112_s9 = smov 2  }
 0x57d   :  { %801 = dma.vmem_to_hbm [thread:$0]  %s796_s5, 64, %s1470_s7, [#allocation4], %s1111_s8, %s1111_s8, %s1112_s9  }
 0x57e   :  { %1101 = dma.done.wait [#allocation4], 64  }
 0x57f   :  { %1102 = vsyncadd [#allocation4], 4294967232 }
 0x580   :  { %805 = vsyncpa [#allocation4], 1 }

</bundles_post_ra>
